<compile_context>
chip_gen: v6e
topology: v6e:2x2x1
jax: 0.10.0
libtpu: 0.0.40
codegen_flags: <defaults>
</compile_context>

<pallas_src>
import functools
import math

import jax
import jax.numpy as jnp
from jax.experimental import pallas as pl
from jax.experimental.pallas import tpu as pltpu


def _cross_attn_kernel(x1_ref, x2_ref, wq_ref, wkv_ref, wo_ref, b_ref, o_ref, *,
                       num_heads, head_dim, scale):
    f32 = jnp.float32
    bf16 = jnp.bfloat16
    D = num_heads * head_dim

    x1 = x1_ref[...].astype(bf16)                                  # (L1, D)
    x2 = x2_ref[...].astype(bf16)                                  # (L2, D)

    # Full-width projections (MXU-friendly N = D / 2D), bf16 operands, f32 acc.
    q = jnp.dot(x1, wq_ref[...].astype(bf16),
                preferred_element_type=f32) + b_ref[0:1, :]        # (L1, D)
    kv = jnp.dot(x2, wkv_ref[...].astype(bf16),
                 preferred_element_type=f32)                       # (L2, 2D)
    k = kv[:, :D] + b_ref[1:2, :]                                  # (L2, D)
    v = kv[:, D:] + b_ref[2:3, :]                                  # (L2, D)

    qb = q.astype(bf16)
    kb = k.astype(bf16)
    vb = v.astype(bf16)

    # Per-head attention; num_heads is small & static -> static unroll.
    ctx_heads = []
    for h in range(num_heads):
        lo = h * head_dim
        hi = lo + head_dim
        qh = qb[:, lo:hi]                                          # (L1, Dh)
        kh = kb[:, lo:hi]                                          # (L2, Dh)
        vh = vb[:, lo:hi]                                          # (L2, Dh)
        # scores = Q K^T * scale, contracting on Dh (no explicit transpose).
        s = jax.lax.dot_general(qh, kh, (((1,), (1,)), ((), ())),
                                preferred_element_type=f32) * scale  # (L1, L2)
        m = jnp.max(s, axis=-1, keepdims=True)
        e = jnp.exp(s - m)                                         # f32 (v5e-safe)
        denom = jnp.sum(e, axis=-1, keepdims=True)
        p = e * pl.reciprocal(denom, approx=True)                  # EUP slot
        ctx_heads.append(jnp.dot(p.astype(bf16), vh,
                                 preferred_element_type=f32))      # (L1, Dh)

    # Concatenate heads; output projection is a single full-width dot.
    ctx = jnp.concatenate(ctx_heads, axis=-1).astype(bf16)         # (L1, D)
    out = jnp.dot(ctx, wo_ref[...].astype(bf16),
                  preferred_element_type=f32) + b_ref[3:4, :]
    o_ref[...] = out.astype(o_ref.dtype)


def prepare_params(params):
    """One-time layout prep (hoisted out of the per-call path)."""
    return dict(
        Wq=params['Wq'],                                                      # (D, D)
        Wkv=jnp.concatenate([params['Wk'], params['Wv']], axis=1),            # (D, 2D)
        Wo=params['Wo'],                                                      # (D, D)
        bias=jnp.concatenate([params['bq'], params['bk'],
                              params['bv'], params['bo']], axis=0),           # (4, D)
    )


def cross_attention(x1, x2, fused_params, num_heads):
    B, L1, D = x1.shape
    B2, L2, D2 = x2.shape
    assert B == B2 and D == D2
    assert D % num_heads == 0
    head_dim = D // num_heads
    scale = float(1.0 / math.sqrt(head_dim))

    kernel = functools.partial(_cross_attn_kernel, num_heads=num_heads,
                               head_dim=head_dim, scale=scale)

    # TODO(synk): for long L1/L2 (esp. v7x 64 MiB VMEM), add an L1-tile grid
    # axis (also "parallel") and tile L2 flash-style with running max/sum
    # instead of materializing the full (L1, L2) scores.
    return pl.pallas_call(
        kernel,
        out_shape=jax.ShapeDtypeStruct((B, L1, D), jnp.float32),
        grid_spec=pltpu.PrefetchScalarGridSpec(
            num_scalar_prefetch=0,
            grid=(B,),
            in_specs=[
                pl.BlockSpec((pl.Squeezed(), L1, D), lambda b: (b, 0, 0)),  # x1[b]
                pl.BlockSpec((pl.Squeezed(), L2, D), lambda b: (b, 0, 0)),  # x2[b]
                pl.BlockSpec((D, D), lambda b: (0, 0)),        # Wq   (VMEM-resident)
                pl.BlockSpec((D, 2 * D), lambda b: (0, 0)),    # [Wk|Wv]
                pl.BlockSpec((D, D), lambda b: (0, 0)),        # Wo
                pl.BlockSpec((4, D), lambda b: (0, 0)),        # [bq;bk;bv;bo]
            ],
            out_specs=pl.BlockSpec((pl.Squeezed(), L1, D), lambda b: (b, 0, 0)),
        ),
        compiler_params=pltpu.CompilerParams(
            dimension_semantics=("parallel",)),
    )(x1, x2, fused_params['Wq'], fused_params['Wkv'],
      fused_params['Wo'], fused_params['bias'])


def init_params(key, embed_dim):
    D = embed_dim
    ks = jax.random.split(key, 8)
    s = 1.0 / math.sqrt(D)
    def u(k, shape):
        return jax.random.uniform(k, shape, jnp.float32, -s, s)
    # weights stored as (in, out) so forward is x @ W + b
    return dict(
        Wq=u(ks[0], (D, D)), bq=u(ks[1], (1, D)),
        Wk=u(ks[2], (D, D)), bk=u(ks[3], (1, D)),
        Wv=u(ks[4], (D, D)), bv=u(ks[5], (1, D)),
        Wo=u(ks[6], (D, D)), bo=u(ks[7], (1, D)),
    )


def reference(x1, x2, params, num_heads):
    """Pure-JAX (XLA, f32) reference mirroring the torch forward semantics."""
    B, L1, D = x1.shape
    L2 = x2.shape[1]
    Dh = D // num_heads
    q = x1 @ params['Wq'] + params['bq']
    k = x2 @ params['Wk'] + params['bk']
    v = x2 @ params['Wv'] + params['bv']
    qh = q.reshape(B, L1, num_heads, Dh).transpose(0, 2, 1, 3)
    kh = k.reshape(B, L2, num_heads, Dh).transpose(0, 2, 1, 3)
    vh = v.reshape(B, L2, num_heads, Dh).transpose(0, 2, 1, 3)
    scores = jnp.einsum('bhqd,bhkd->bhqk', qh, kh) / jnp.sqrt(jnp.float32(Dh))
    attn = jax.nn.softmax(scores, axis=-1)
    ctx = jnp.einsum('bhqk,bhkd->bhqd', attn, vh)
    ctx = ctx.transpose(0, 2, 1, 3).reshape(B, L1, D)
    return ctx @ params['Wo'] + params['bo']


if __name__ == "__main__":
    key = jax.random.PRNGKey(0)
    B, L1, L2, D, H = 2, 16, 8, 32, 4          # embed_dim=32, num_heads=4
    k1, k2, kp = jax.random.split(key, 3)
    x1 = jax.random.normal(k1, (B, L1, D), jnp.float32)
    x2 = jax.random.normal(k2, (B, L2, D), jnp.float32)
    params = init_params(kp, D)
    fused = prepare_params(params)             # one-time layout prep

    out = cross_attention(x1, x2, fused, H)
    jax.block_until_ready(out)

    ref = reference(x1, x2, params, H)
    assert out.shape == (B, L1, D)
    # bf16 matmul operands (f32 accumulation) + approx reciprocal -> ~1e-3 error.
    assert jnp.allclose(out, ref, atol=2e-2, rtol=2e-2), "cross-attention mismatch"
    print("KERNEL_OK")
</pallas_src>

<mosaic_0001>
module attributes {stable_mosaic.version = 11 : i64} {
  func.func @_cross_attn_kernel(%arg0: i32, %arg1: memref<1x16x32xf32, #tpu.memory_space<vmem>>, %arg2: memref<1x8x32xf32, #tpu.memory_space<vmem>>, %arg3: memref<32x32xf32, #tpu.memory_space<vmem>>, %arg4: memref<32x64xf32, #tpu.memory_space<vmem>>, %arg5: memref<32x32xf32, #tpu.memory_space<vmem>>, %arg6: memref<4x32xf32, #tpu.memory_space<vmem>>, %arg7: memref<1x16x32xf32, #tpu.memory_space<vmem>>) attributes {dimension_semantics = [#tpu.dimension_semantics<parallel>], iteration_bounds = array<i64: 2>, scalar_prefetch = 0 : i64, scratch_operands = 0 : i64, tpu.core_type = #tpu.core_type<tc>, window_params = [{transform_indices = @transform_0, window_bounds = array<i64: 1, 16, 32>}, {transform_indices = @transform_1, window_bounds = array<i64: 1, 8, 32>}, {pipeline_mode = #tpu.pipeline_mode<synchronous>, transform_indices = @transform_2, window_bounds = array<i64: 32, 32>}, {pipeline_mode = #tpu.pipeline_mode<synchronous>, transform_indices = @transform_3, window_bounds = array<i64: 32, 64>}, {pipeline_mode = #tpu.pipeline_mode<synchronous>, transform_indices = @transform_4, window_bounds = array<i64: 32, 32>}, {pipeline_mode = #tpu.pipeline_mode<synchronous>, transform_indices = @transform_5, window_bounds = array<i64: 4, 32>}, {transform_indices = @transform_6, window_bounds = array<i64: 1, 16, 32>}]} {
    %c0 = arith.constant 0 : index
    %c0_0 = arith.constant 0 : index
    %c0_1 = arith.constant 0 : index
    %0 = vector.load %arg1[%c0, %c0_0, %c0_1] : memref<1x16x32xf32, #tpu.memory_space<vmem>>, vector<1x16x32xf32>
    %1 = vector.shape_cast %0 : vector<1x16x32xf32> to vector<16x32xf32>
    %2 = arith.truncf %1 : vector<16x32xf32> to vector<16x32xbf16>
    %c0_2 = arith.constant 0 : index
    %c0_3 = arith.constant 0 : index
    %c0_4 = arith.constant 0 : index
    %3 = vector.load %arg2[%c0_2, %c0_3, %c0_4] : memref<1x8x32xf32, #tpu.memory_space<vmem>>, vector<1x8x32xf32>
    %4 = vector.shape_cast %3 : vector<1x8x32xf32> to vector<8x32xf32>
    %5 = arith.truncf %4 : vector<8x32xf32> to vector<8x32xbf16>
    %c0_5 = arith.constant 0 : index
    %c0_6 = arith.constant 0 : index
    %6 = vector.load %arg3[%c0_5, %c0_6] : memref<32x32xf32, #tpu.memory_space<vmem>>, vector<32x32xf32>
    %7 = arith.truncf %6 : vector<32x32xf32> to vector<32x32xbf16>
    %cst = arith.constant dense<0.000000e+00> : vector<16x32xf32>
    %8 = tpu.matmul %2, %7, %cst {dimension_numbers = #tpu.dot_dimension_numbers<[1], [0], [0], [1], [0, 0, 1, 1], [], []>} : vector<16x32xbf16>, vector<32x32xbf16>, vector<16x32xf32> -> vector<16x32xf32>
    %c0_7 = arith.constant 0 : index
    %c0_8 = arith.constant 0 : index
    %9 = vector.load %arg6[%c0_7, %c0_8] : memref<4x32xf32, #tpu.memory_space<vmem>>, vector<1x32xf32>
    %10 = vector.broadcast %9 : vector<1x32xf32> to vector<16x32xf32>
    %11 = arith.addf %8, %10 : vector<16x32xf32>
    %c0_9 = arith.constant 0 : index
    %c0_10 = arith.constant 0 : index
    %12 = vector.load %arg4[%c0_9, %c0_10] : memref<32x64xf32, #tpu.memory_space<vmem>>, vector<32x64xf32>
    %13 = arith.truncf %12 : vector<32x64xf32> to vector<32x64xbf16>
    %cst_11 = arith.constant dense<0.000000e+00> : vector<8x64xf32>
    %14 = tpu.matmul %5, %13, %cst_11 {dimension_numbers = #tpu.dot_dimension_numbers<[1], [0], [0], [1], [0, 0, 1, 1], [], []>} : vector<8x32xbf16>, vector<32x64xbf16>, vector<8x64xf32> -> vector<8x64xf32>
    %15 = vector.extract_strided_slice %14 {offsets = [0, 0], sizes = [8, 32], strides = [1, 1]} : vector<8x64xf32> to vector<8x32xf32>
    %c1 = arith.constant 1 : index
    %c0_12 = arith.constant 0 : index
    %16 = vector.load %arg6[%c1, %c0_12] : memref<4x32xf32, #tpu.memory_space<vmem>>, vector<1x32xf32>
    %17 = vector.broadcast %16 : vector<1x32xf32> to vector<8x32xf32>
    %18 = arith.addf %15, %17 : vector<8x32xf32>
    %19 = vector.extract_strided_slice %14 {offsets = [0, 32], sizes = [8, 32], strides = [1, 1]} : vector<8x64xf32> to vector<8x32xf32>
    %c2 = arith.constant 2 : index
    %c0_13 = arith.constant 0 : index
    %20 = vector.load %arg6[%c2, %c0_13] : memref<4x32xf32, #tpu.memory_space<vmem>>, vector<1x32xf32>
    %21 = vector.broadcast %20 : vector<1x32xf32> to vector<8x32xf32>
    %22 = arith.addf %19, %21 : vector<8x32xf32>
    %23 = arith.truncf %11 : vector<16x32xf32> to vector<16x32xbf16>
    %24 = arith.truncf %18 : vector<8x32xf32> to vector<8x32xbf16>
    %25 = arith.truncf %22 : vector<8x32xf32> to vector<8x32xbf16>
    %26 = vector.extract_strided_slice %23 {offsets = [0, 0], sizes = [16, 8], strides = [1, 1]} : vector<16x32xbf16> to vector<16x8xbf16>
    %27 = vector.extract_strided_slice %24 {offsets = [0, 0], sizes = [8, 8], strides = [1, 1]} : vector<8x32xbf16> to vector<8x8xbf16>
    %28 = vector.extract_strided_slice %25 {offsets = [0, 0], sizes = [8, 8], strides = [1, 1]} : vector<8x32xbf16> to vector<8x8xbf16>
    %cst_14 = arith.constant dense<0.000000e+00> : vector<16x8xf32>
    %29 = tpu.matmul %26, %27, %cst_14 {dimension_numbers = #tpu.dot_dimension_numbers<[1], [1], [0], [0], [0, 0, 1, 0], [], []>} : vector<16x8xbf16>, vector<8x8xbf16>, vector<16x8xf32> -> vector<16x8xf32>
    %cst_15 = arith.constant 0.353553385 : f32
    %30 = vector.broadcast %cst_15 : f32 to vector<16x8xf32>
    %31 = arith.mulf %29, %30 : vector<16x8xf32>
    %cst_16 = arith.constant dense<0xFF800000> : vector<16xf32>
    %32 = vector.multi_reduction <maximumf>, %31, %cst_16 [1] : vector<16x8xf32> to vector<16xf32>
    %33 = vector.shape_cast %32 : vector<16xf32> to vector<16x1xf32>
    %34 = vector.broadcast %33 : vector<16x1xf32> to vector<16x8xf32>
    %35 = arith.subf %31, %34 : vector<16x8xf32>
    %36 = math.exp %35 : vector<16x8xf32>
    %cst_17 = arith.constant dense<0.000000e+00> : vector<16xf32>
    %37 = vector.multi_reduction <add>, %36, %cst_17 [1] : vector<16x8xf32> to vector<16xf32>
    %38 = vector.shape_cast %37 : vector<16xf32> to vector<16x1xf32>
    %39 = tpu.reciprocal %38 {approx = true} : vector<16x1xf32> -> vector<16x1xf32>
    %40 = vector.broadcast %39 : vector<16x1xf32> to vector<16x8xf32>
    %41 = arith.mulf %36, %40 : vector<16x8xf32>
    %42 = arith.truncf %41 : vector<16x8xf32> to vector<16x8xbf16>
    %cst_18 = arith.constant dense<0.000000e+00> : vector<16x8xf32>
    %43 = tpu.matmul %42, %28, %cst_18 {dimension_numbers = #tpu.dot_dimension_numbers<[1], [0], [0], [1], [0, 0, 1, 1], [], []>} : vector<16x8xbf16>, vector<8x8xbf16>, vector<16x8xf32> -> vector<16x8xf32>
    %44 = vector.extract_strided_slice %23 {offsets = [0, 8], sizes = [16, 8], strides = [1, 1]} : vector<16x32xbf16> to vector<16x8xbf16>
    %45 = vector.extract_strided_slice %24 {offsets = [0, 8], sizes = [8, 8], strides = [1, 1]} : vector<8x32xbf16> to vector<8x8xbf16>
    %46 = vector.extract_strided_slice %25 {offsets = [0, 8], sizes = [8, 8], strides = [1, 1]} : vector<8x32xbf16> to vector<8x8xbf16>
    %cst_19 = arith.constant dense<0.000000e+00> : vector<16x8xf32>
    %47 = tpu.matmul %44, %45, %cst_19 {dimension_numbers = #tpu.dot_dimension_numbers<[1], [1], [0], [0], [0, 0, 1, 0], [], []>} : vector<16x8xbf16>, vector<8x8xbf16>, vector<16x8xf32> -> vector<16x8xf32>
    %cst_20 = arith.constant 0.353553385 : f32
    %48 = vector.broadcast %cst_20 : f32 to vector<16x8xf32>
    %49 = arith.mulf %47, %48 : vector<16x8xf32>
    %cst_21 = arith.constant dense<0xFF800000> : vector<16xf32>
    %50 = vector.multi_reduction <maximumf>, %49, %cst_21 [1] : vector<16x8xf32> to vector<16xf32>
    %51 = vector.shape_cast %50 : vector<16xf32> to vector<16x1xf32>
    %52 = vector.broadcast %51 : vector<16x1xf32> to vector<16x8xf32>
    %53 = arith.subf %49, %52 : vector<16x8xf32>
    %54 = math.exp %53 : vector<16x8xf32>
    %cst_22 = arith.constant dense<0.000000e+00> : vector<16xf32>
    %55 = vector.multi_reduction <add>, %54, %cst_22 [1] : vector<16x8xf32> to vector<16xf32>
    %56 = vector.shape_cast %55 : vector<16xf32> to vector<16x1xf32>
    %57 = tpu.reciprocal %56 {approx = true} : vector<16x1xf32> -> vector<16x1xf32>
    %58 = vector.broadcast %57 : vector<16x1xf32> to vector<16x8xf32>
    %59 = arith.mulf %54, %58 : vector<16x8xf32>
    %60 = arith.truncf %59 : vector<16x8xf32> to vector<16x8xbf16>
    %cst_23 = arith.constant dense<0.000000e+00> : vector<16x8xf32>
    %61 = tpu.matmul %60, %46, %cst_23 {dimension_numbers = #tpu.dot_dimension_numbers<[1], [0], [0], [1], [0, 0, 1, 1], [], []>} : vector<16x8xbf16>, vector<8x8xbf16>, vector<16x8xf32> -> vector<16x8xf32>
    %62 = vector.extract_strided_slice %23 {offsets = [0, 16], sizes = [16, 8], strides = [1, 1]} : vector<16x32xbf16> to vector<16x8xbf16>
    %63 = vector.extract_strided_slice %24 {offsets = [0, 16], sizes = [8, 8], strides = [1, 1]} : vector<8x32xbf16> to vector<8x8xbf16>
    %64 = vector.extract_strided_slice %25 {offsets = [0, 16], sizes = [8, 8], strides = [1, 1]} : vector<8x32xbf16> to vector<8x8xbf16>
    %cst_24 = arith.constant dense<0.000000e+00> : vector<16x8xf32>
    %65 = tpu.matmul %62, %63, %cst_24 {dimension_numbers = #tpu.dot_dimension_numbers<[1], [1], [0], [0], [0, 0, 1, 0], [], []>} : vector<16x8xbf16>, vector<8x8xbf16>, vector<16x8xf32> -> vector<16x8xf32>
    %cst_25 = arith.constant 0.353553385 : f32
    %66 = vector.broadcast %cst_25 : f32 to vector<16x8xf32>
    %67 = arith.mulf %65, %66 : vector<16x8xf32>
    %cst_26 = arith.constant dense<0xFF800000> : vector<16xf32>
    %68 = vector.multi_reduction <maximumf>, %67, %cst_26 [1] : vector<16x8xf32> to vector<16xf32>
    %69 = vector.shape_cast %68 : vector<16xf32> to vector<16x1xf32>
    %70 = vector.broadcast %69 : vector<16x1xf32> to vector<16x8xf32>
    %71 = arith.subf %67, %70 : vector<16x8xf32>
    %72 = math.exp %71 : vector<16x8xf32>
    %cst_27 = arith.constant dense<0.000000e+00> : vector<16xf32>
    %73 = vector.multi_reduction <add>, %72, %cst_27 [1] : vector<16x8xf32> to vector<16xf32>
    %74 = vector.shape_cast %73 : vector<16xf32> to vector<16x1xf32>
    %75 = tpu.reciprocal %74 {approx = true} : vector<16x1xf32> -> vector<16x1xf32>
    %76 = vector.broadcast %75 : vector<16x1xf32> to vector<16x8xf32>
    %77 = arith.mulf %72, %76 : vector<16x8xf32>
    %78 = arith.truncf %77 : vector<16x8xf32> to vector<16x8xbf16>
    %cst_28 = arith.constant dense<0.000000e+00> : vector<16x8xf32>
    %79 = tpu.matmul %78, %64, %cst_28 {dimension_numbers = #tpu.dot_dimension_numbers<[1], [0], [0], [1], [0, 0, 1, 1], [], []>} : vector<16x8xbf16>, vector<8x8xbf16>, vector<16x8xf32> -> vector<16x8xf32>
    %80 = vector.extract_strided_slice %23 {offsets = [0, 24], sizes = [16, 8], strides = [1, 1]} : vector<16x32xbf16> to vector<16x8xbf16>
    %81 = vector.extract_strided_slice %24 {offsets = [0, 24], sizes = [8, 8], strides = [1, 1]} : vector<8x32xbf16> to vector<8x8xbf16>
    %82 = vector.extract_strided_slice %25 {offsets = [0, 24], sizes = [8, 8], strides = [1, 1]} : vector<8x32xbf16> to vector<8x8xbf16>
    %cst_29 = arith.constant dense<0.000000e+00> : vector<16x8xf32>
    %83 = tpu.matmul %80, %81, %cst_29 {dimension_numbers = #tpu.dot_dimension_numbers<[1], [1], [0], [0], [0, 0, 1, 0], [], []>} : vector<16x8xbf16>, vector<8x8xbf16>, vector<16x8xf32> -> vector<16x8xf32>
    %cst_30 = arith.constant 0.353553385 : f32
    %84 = vector.broadcast %cst_30 : f32 to vector<16x8xf32>
    %85 = arith.mulf %83, %84 : vector<16x8xf32>
    %cst_31 = arith.constant dense<0xFF800000> : vector<16xf32>
    %86 = vector.multi_reduction <maximumf>, %85, %cst_31 [1] : vector<16x8xf32> to vector<16xf32>
    %87 = vector.shape_cast %86 : vector<16xf32> to vector<16x1xf32>
    %88 = vector.broadcast %87 : vector<16x1xf32> to vector<16x8xf32>
    %89 = arith.subf %85, %88 : vector<16x8xf32>
    %90 = math.exp %89 : vector<16x8xf32>
    %cst_32 = arith.constant dense<0.000000e+00> : vector<16xf32>
    %91 = vector.multi_reduction <add>, %90, %cst_32 [1] : vector<16x8xf32> to vector<16xf32>
    %92 = vector.shape_cast %91 : vector<16xf32> to vector<16x1xf32>
    %93 = tpu.reciprocal %92 {approx = true} : vector<16x1xf32> -> vector<16x1xf32>
    %94 = vector.broadcast %93 : vector<16x1xf32> to vector<16x8xf32>
    %95 = arith.mulf %90, %94 : vector<16x8xf32>
    %96 = arith.truncf %95 : vector<16x8xf32> to vector<16x8xbf16>
    %cst_33 = arith.constant dense<0.000000e+00> : vector<16x8xf32>
    %97 = tpu.matmul %96, %82, %cst_33 {dimension_numbers = #tpu.dot_dimension_numbers<[1], [0], [0], [1], [0, 0, 1, 1], [], []>} : vector<16x8xbf16>, vector<8x8xbf16>, vector<16x8xf32> -> vector<16x8xf32>
    %98 = tpu.concatenate %43, %61, %79, %97 in 1 : vector<16x8xf32>, vector<16x8xf32>, vector<16x8xf32>, vector<16x8xf32> -> vector<16x32xf32>
    %99 = arith.truncf %98 : vector<16x32xf32> to vector<16x32xbf16>
    %c0_34 = arith.constant 0 : index
    %c0_35 = arith.constant 0 : index
    %100 = vector.load %arg5[%c0_34, %c0_35] : memref<32x32xf32, #tpu.memory_space<vmem>>, vector<32x32xf32>
    %101 = arith.truncf %100 : vector<32x32xf32> to vector<32x32xbf16>
    %cst_36 = arith.constant dense<0.000000e+00> : vector<16x32xf32>
    %102 = tpu.matmul %99, %101, %cst_36 {dimension_numbers = #tpu.dot_dimension_numbers<[1], [0], [0], [1], [0, 0, 1, 1], [], []>} : vector<16x32xbf16>, vector<32x32xbf16>, vector<16x32xf32> -> vector<16x32xf32>
    %c3 = arith.constant 3 : index
    %c0_37 = arith.constant 0 : index
    %103 = vector.load %arg6[%c3, %c0_37] : memref<4x32xf32, #tpu.memory_space<vmem>>, vector<1x32xf32>
    %104 = vector.broadcast %103 : vector<1x32xf32> to vector<16x32xf32>
    %105 = arith.addf %102, %104 : vector<16x32xf32>
    %c0_38 = arith.constant 0 : index
    %c0_39 = arith.constant 0 : index
    %c0_40 = arith.constant 0 : index
    %106 = vector.load %arg7[%c0_38, %c0_39, %c0_40] : memref<1x16x32xf32, #tpu.memory_space<vmem>>, vector<1x16x32xf32>
    %107 = vector.shape_cast %106 : vector<1x16x32xf32> to vector<16x32xf32>
    %108 = vector.shape_cast %105 : vector<16x32xf32> to vector<1x16x32xf32>
    tpu.vector_store %arg7[%c0_38, %c0_39, %c0_40], %108 {strides = array<i32>} : memref<1x16x32xf32, #tpu.memory_space<vmem>>, vector<1x16x32xf32>,
    return
  }
  func.func @transform_0(%arg0: i32) -> (i32, i32, i32) {
    %c0_i32 = arith.constant 0 : i32
    %c0_i32_0 = arith.constant 0 : i32
    %c0_i32_1 = arith.constant 0 : i32
    return %arg0, %c0_i32, %c0_i32_0 : i32, i32, i32
  }
  func.func @transform_1(%arg0: i32) -> (i32, i32, i32) {
    %c0_i32 = arith.constant 0 : i32
    %c0_i32_0 = arith.constant 0 : i32
    %c0_i32_1 = arith.constant 0 : i32
    return %arg0, %c0_i32, %c0_i32_0 : i32, i32, i32
  }
  func.func @transform_2(%arg0: i32) -> (i32, i32) {
    %c0_i32 = arith.constant 0 : i32
    %c0_i32_0 = arith.constant 0 : i32
    %c0_i32_1 = arith.constant 0 : i32
    return %c0_i32, %c0_i32_0 : i32, i32
  }
  func.func @transform_3(%arg0: i32) -> (i32, i32) {
    %c0_i32 = arith.constant 0 : i32
    %c0_i32_0 = arith.constant 0 : i32
    %c0_i32_1 = arith.constant 0 : i32
    return %c0_i32, %c0_i32_0 : i32, i32
  }
  func.func @transform_4(%arg0: i32) -> (i32, i32) {
    %c0_i32 = arith.constant 0 : i32
    %c0_i32_0 = arith.constant 0 : i32
    %c0_i32_1 = arith.constant 0 : i32
    return %c0_i32, %c0_i32_0 : i32, i32
  }
  func.func @transform_5(%arg0: i32) -> (i32, i32) {
    %c0_i32 = arith.constant 0 : i32
    %c0_i32_0 = arith.constant 0 : i32
    %c0_i32_1 = arith.constant 0 : i32
    return %c0_i32, %c0_i32_0 : i32, i32
  }
  func.func @transform_6(%arg0: i32) -> (i32, i32, i32) {
    %c0_i32 = arith.constant 0 : i32
    %c0_i32_0 = arith.constant 0 : i32
    %c0_i32_1 = arith.constant 0 : i32
    return %arg0, %c0_i32, %c0_i32_0 : i32, i32, i32
  }
}

</mosaic_0001>

<bundles_post_ra>
// kernel: tpu_custom_call.1
= control target key start
LH: loop header
LB: loop body
LE: loop exit
PB: predicated region body
PF: predicated region fallthrough
CT: control target
= control target key end

     0   :  { %s2124_s0 = inlined_call_operand.hbm [shape: f32[2,16,32], index: 0, kind: input, shape index: {}]   ;;  %s2125_s1 = inlined_call_operand.hbm [shape: f32[2,8,32], index: 1, kind: input, shape index: {}]   ;;  %s2126_s2 = inlined_call_operand.hbm [shape: f32[32,32], index: 2, kind: input, shape index: {}]   ;;  %s2127_s3 = inlined_call_operand.hbm [shape: f32[32,64], index: 3, kind: input, shape index: {}]   ;;  %s2128_s4 = inlined_call_operand.hbm [shape: f32[32,32], index: 4, kind: input, shape index: {}]   ;;  %s2129_s5 = inlined_call_operand.vmem [shape: f32[4,32], index: 5, kind: input, shape index: {}]   ;;  %s2130_s6 = inlined_call_operand.hbm [shape: f32[2,16,32], index: 6, kind: output, shape index: {}]  }
   0x1   :  { %2136 = sst [smem:[#allocation17_spill]] %s2124_s0 }
   0x2   :  { %2137 = sst [smem:[#allocation18_spill]] %s2126_s2 }
   0x3   :  { %2138 = sst [smem:[#allocation19_spill]] %s2127_s3 }
   0x4   :  { %2139 = sst [smem:[#allocation20_spill]] %s2128_s4 }
   0x5   :  { %11 = vsyncpa [#allocation3], 0 }
   0x6   :  { %13 = vsyncpa [#allocation3 + $0x1], 0 }
   0x7   :  { %14 = vsyncpa [#allocation6], 0 }
   0x8   :  { %16 = vsyncpa [#allocation6 + $0x1], 0 }
   0x9   :  { %17 = vsyncpa [#allocation9], 0 }
   0xa   :  { %18 = vsyncpa [#allocation4], 0 }
   0xb   :  { %20 = vsyncpa [#allocation4 + $0x1], 0  ;;  %s1760_s21 = smov 0   ;;  %s1762_s22 = smov 0  }
   0xc   :  { %s1764_s23 = smov 0   ;;  %s1766_s24 = smov 0  }
   0xd LB: > { %s1781_s25 = sadd.s32 4294967295, %s1701_s24   ;;  %s1209_s26 = sadd.s32 4294967294, %s1701_s24   ;;  %s1701_s24 = sphi %s1766_s24, %s2165_s24   ;;  %s1697_s23 = sphi %s1764_s23, %s2164_s23   ;;  %s1693_s22 = sphi %s1762_s22, %s2163_s22   ;;  %s1689_s21 = sphi %s1760_s21, %s2162_s21  }
   0xe   : > { %p46_p0 = scmp.ne.s32.totalorder %s1693_s22, %s1689_s21  ;;  %p2131_p1 = scmp.eq.s32.totalorder %s1781_s25, 0 }
   0xf   : > { %p180_p2 = scmp.eq.s32.totalorder %s1781_s25, 1  ;;  %p186_p3 = scmp.eq.s32.totalorder %s1209_s26, 1 }
  0x10   : > { %p1790_p4 = por %p2131_p1, %p46_p0  ;;  %p1210_p5 = scmp.ge.s32.totalorder %s1701_s24, 1 }
  0x11   : > { %p1795_p6 = por %p186_p3, %p46_p0  ;;  %p193_p7 = scmp.lt.s32.totalorder %s1701_s24, 3 }
  0x12   : > { %s2140_s27 = scalar_select %p1790_p4, 1, 0 }
  0x13   : > { %s2141_s28 = scalar_select %p1795_p6, 1, 0 }
  0x14   : > { %p1800_p8 = pnand %p1210_p5, %p193_p7  ;;  %s1703_s30 = smov [#allocation7]  }
  0x15   : > { %s205_s7 = sshll.u32 %s1703_s30, 4  ;;  %s1704_s9 = smov [#allocation8]   ;;  %s206_s7 = int_to_ptr.vmem [resolvable:$true] %s205_s7 }
  0x16   : > { %s2142_s29 = scalar_select %p1800_p8, 1, 0 }
  0x17   : > { %p1364_p9 = pneg %p1800_p8  ;;  %s218_s10 = sshll.u32 %s1704_s9, 4  ;;  %s219_s10 = int_to_ptr.vmem [resolvable:$true] %s218_s10 }
  0x18   : > { %s1705_s11 = smov [#allocation10]   ;;  %s1502_s13 = scalar_lea.vmem %s206_s7, 512 }
  0x19   : > { %p1809_p11 = pnand %p1364_p9, %p2131_p1  ;;  %s231_s12 = sshll.u32 %s1705_s11, 4  ;;  %s232_s12 = int_to_ptr.vmem [resolvable:$true] %s231_s12 }
  0x1a   : > { %p1503_p13 = scmp.ne.s32.totalorder %s206_s7, %s1502_s13  ;;  %p1510_p5 = scmp.lt.s32.totalorder %s206_s7, %s206_s7 }
  0x1b   : > { %p1493_p12 = pneg %p1809_p11  ;;  %p1511_p7 = scmp.lt.s32.totalorder %s1502_s13, %s1502_s13 }
  0x1d   : > { %p1505_p0 = pnand %p1503_p13, %p1493_p12  ;;  %p1512_p9 = por %p1511_p7, %p1510_p5 }
  0x1f   : > { %p1506_p3 = pneg %p1505_p0 }
  0x21   : > { %p1513_p10 = pnand %p1512_p9, %p1506_p3 }
  0x23   : > { %1516 = shalt.err (!%p1513_p10)
}
  0x24   : > { %s2132_s14 = smov 128   ;;  %s1707_s15 = smov 8  }
  0x25   : > { %s2144_s2 = sld [smem:[#allocation18_spill]]  ;;  %s1528_s18 = scalar_lea.vmem %s219_s10, 512 }
  0x26   : > { %p1529_p13 = scmp.ne.s32.totalorder %s219_s10, %s1528_s18  ;;  %p1536_p3 = scmp.lt.s32.totalorder %s219_s10, %s219_s10 }
  0x27   : > { %p1537_p10 = scmp.lt.s32.totalorder %s1528_s18, %s1528_s18 }
  0x28   : > { %p1531_p0 = pnand %p1529_p13, %p1493_p12 }
  0x29   : > { %p1538_p7 = por %p1537_p10, %p1536_p3 }
  0x2a   : > { %p1532_p5 = pneg %p1531_p0 }
  0x2b   : > { %1367 = dma.hbm_to_vmem [thread:$0]  (!%p1809_p11), %s2144_s2, 512, %s206_s7, [#allocation6], %s2132_s14, %s2132_s14, %s1707_s15  }
  0x2c   : > { %p1539_p9 = pnand %p1538_p7, %p1532_p5 }
  0x2e   : > { %1542 = shalt.err (!%p1539_p9)
}
  0x2f   : > { %s2145_s3 = sld [smem:[#allocation19_spill]]  ;;  %s1554_s26 = scalar_lea.vmem %s232_s12, 512 }
  0x30   : > { %p1555_p1 = scmp.ne.s32.totalorder %s232_s12, %s1554_s26  ;;  %p1562_p3 = scmp.lt.s32.totalorder %s232_s12, %s232_s12 }
  0x31   : > { %p1563_p5 = scmp.lt.s32.totalorder %s1554_s26, %s1554_s26 }
  0x32   : > { %p1557_p13 = pnand %p1555_p1, %p1493_p12 }
  0x33   : > { %p1564_p10 = por %p1563_p5, %p1562_p3 }
  0x34   : > { %p1558_p0 = pneg %p1557_p13 }
  0x35   : > { %1370 = dma.hbm_to_vmem [thread:$0]  (!%p1809_p11), %s2145_s3, 512, %s219_s10, [#allocation9], %s2132_s14, %s2132_s14, %s1707_s15  }
  0x36   : > { %p1565_p7 = pnand %p1564_p10, %p1558_p0 }
  0x38   : > { %1568 = shalt.err (!%p1565_p7)
}
  0x39   : > { %s2146_s4 = sld [smem:[#allocation20_spill]]  ;;  %s1849_s9 = sadd.s32 1, %s1701_s24  }
  0x3a   : > { %s30_s8 = ssub.s32 %s1701_s24, %s1849_s9  ;;  %s33_s10 = sadd.s32 1, %s1697_s23 }
  0x3b   : > { %p31_p1 = scmp.eq.s32.totalorder %s30_s8, 0  ;;  %p40_p12 = scmp.ne.s32.totalorder %s1697_s23, %s1693_s22 }
  0x3c   : > { %p41_p9 = scmp.eq.s32.totalorder %s1701_s24, 0  ;;  %p1388_p13 = scmp.lt.s32.totalorder %s1701_s24, 2 }
  0x3d   : > { %s1859_s11 = scalar_select %p31_p1, %s1697_s23, %s33_s10  }
  0x3e   : > { %p42_p0 = por %p41_p9, %p40_p12  ;;  %p1863_p3 = por %p180_p2, %p40_p12 }
  0x3f   : > { %1373 = dma.hbm_to_vmem [thread:$0]  (!%p1809_p11), %s2146_s4, 512, %s232_s12, [#allocation9], %s2132_s14, %s2132_s14, %s1707_s15  }
  0x40   : > { %s2147_s13 = scalar_select %p1863_p3, 1, 0 }
  0x41   : > { %s1868_s16 = sand.u32 1, %s1697_s23   ;;  %s1247_s12 = sshll.u32 %s1701_s24, 8 }
  0x42   : > { %s1215_s17 = sshll.u32 %s1868_s16, 4  ;;  %s2148_s0 = sld [smem:[#allocation17_spill]] }
  0x43   : > { %s252_s26 = scalar_lea.vmem [#allocation2], %s1215_s17  ;;  %p1877_p2 = pnand %p1388_p13, %p42_p0 }
  0x44   : > { %s259_s30 = sshll.u32 %s252_s26, 4  ;;  %s1881_s30 = int_to_ptr.vmem [resolvable:$true] %s259_s30 }
  0x45   : > { %p1571_p5 = pneg %p1877_p2 }
  0x48   : > { %s1875_s20 = scalar_lea.hbm %s2148_s0, %s1247_s12  ;;  %s1574_s18 = scalar_lea.hbm %s2148_s0, 512 }
  0x49   : > { %s1569_s14 = scalar_lea.hbm %s1875_s20, 256  ;;  %p1575_p1 = scmp.lt.s32.totalorder %s1875_s20, %s2148_s0 }
  0x4a   : > { %p1570_p11 = scmp.ne.s32.totalorder %s1875_s20, %s1569_s14  ;;  %p1576_p12 = scmp.lt.s32.totalorder %s1574_s18, %s1569_s14 }
  0x4c   : > { %p1572_p10 = pnand %p1571_p5, %p1570_p11  ;;  %p1577_p9 = por %p1576_p12, %p1575_p1 }
  0x4e   : > { %p1573_p7 = pneg %p1572_p10 }
  0x50   : > { %p1578_p13 = pnand %p1577_p9, %p1573_p7 }
  0x52   : > { %1581 = shalt.err (!%p1578_p13)
}
  0x53   : > { %s1582_s8 = scalar_lea.vmem %s1881_s30, 256  ;;  %s1708_s12 = smov [#allocation2]  }
  0x54   : > { %p1583_p0 = scmp.ne.s32.totalorder %s1881_s30, %s1582_s8  ;;  %s1587_s17 = sshll.u32 %s1708_s12, 4  ;;  %s1588_s17 = int_to_ptr.vmem [resolvable:$false] %s1587_s17 }
  0x55   : > { %s1589_s10 = scalar_lea.vmem %s1588_s17, 512  ;;  %p1590_p6 = scmp.lt.s32.totalorder %s1881_s30, %s1588_s17 }
  0x56   : > { %p1585_p11 = pnand %p1583_p0, %p1571_p5  ;;  %p1591_p3 = scmp.lt.s32.totalorder %s1589_s10, %s1582_s8 }
  0x58   : > { %p1586_p10 = pneg %p1585_p11  ;;  %p1592_p4 = por %p1591_p3, %p1590_p6 }
  0x5a   : > { %p1593_p1 = pnand %p1592_p4, %p1586_p10 }
  0x5c   : > { %1596 = shalt.err (!%p1593_p1)
}
  0x5d   : > { %s2150_s14 = smov 128   ;;  %s2151_s18 = scalar_lea.sflag [#allocation3], %s1868_s16 }
  0x5e   : > { %1377 = dma.hbm_to_vmem [thread:$0]  (!%p1877_p2), %s1875_s20, 256, %s1881_s30, %s2151_s18, %s2150_s14, %s2150_s14, %s1707_s15  }
  0x5f   : > { %s1218_s19 = sshll.u32 %s1868_s16, 3  ;;  %s1219_s26 = sshll.u32 %s1701_s24, 7 }
  0x60   : > { %s1919_s12 = scalar_lea.hbm %s2125_s1, %s1219_s26  ;;  %s273_s17 = scalar_lea.vmem [#allocation5], %s1218_s19 }
  0x61   : > { %s280_s0 = sshll.u32 %s273_s17, 4  ;;  %s2152_s2 = sand.u32 1, %s1701_s24   ;;  %s281_s0 = int_to_ptr.vmem [resolvable:$true] %s280_s0 }
  0x62   : > { %s270_s3 = scalar_lea.sflag [#allocation6], %s2152_s2  ;;  %s1597_s4 = scalar_lea.hbm %s1919_s12, 128 }
  0x63   : > { %p1598_p4 = scmp.ne.s32.totalorder %s1919_s12, %s1597_s4  ;;  %s1602_s20 = scalar_lea.hbm %s2125_s1, 256 }
  0x64   : > { %p1603_p7 = scmp.lt.s32.totalorder %s1919_s12, %s2125_s1  ;;  %p1604_p12 = scmp.lt.s32.totalorder %s1602_s20, %s1597_s4 }
  0x65   : > { %p1600_p6 = pnand %p1598_p4, %p1571_p5 }
  0x66   : > { %p1605_p9 = por %p1604_p12, %p1603_p7 }
  0x67   : > { %p1601_p3 = pneg %p1600_p6 }
  0x69   : > { %p1606_p13 = pnand %p1605_p9, %p1601_p3 }
  0x6b   : > { %1609 = shalt.err (!%p1606_p13)
}
  0x6c   : > { %s1610_s18 = scalar_lea.vmem %s281_s0, 128  ;;  %s1709_s2 = smov [#allocation5]  }
  0x6d   : > { %p1611_p0 = scmp.ne.s32.totalorder %s281_s0, %s1610_s18  ;;  %s1615_s19 = sshll.u32 %s1709_s2, 4  ;;  %s1616_s19 = int_to_ptr.vmem [resolvable:$false] %s1615_s19 }
  0x6e   : > { %s1617_s26 = scalar_lea.vmem %s1616_s19, 256  ;;  %p1618_p1 = scmp.lt.s32.totalorder %s281_s0, %s1616_s19 }
  0x6f   : > { %p1613_p11 = pnand %p1611_p0, %p1571_p5  ;;  %p1619_p4 = scmp.lt.s32.totalorder %s1617_s26, %s1610_s18 }
  0x71   : > { %p1614_p10 = pneg %p1613_p11  ;;  %p1620_p6 = por %p1619_p4, %p1618_p1 }
  0x73   : > { %p1621_p8 = pnand %p1620_p6, %p1614_p10 }
  0x75   : > { %1624 = shalt.err (!%p1621_p8)
}
  0x76   : > { %1380 = dma.hbm_to_vmem [thread:$0]  (!%p1877_p2), %s1919_s12, 128, %s281_s0, %s270_s3  }
  0x77   : > { %p2153_p3 = scmp.ne.s32.totalorder %s2142_s29, 0 }
  0x78   : > { %s1944_s4 = sand.u32 (!%p2153_p3), 1, %s1693_s22   ;;  %p2154_p8 = scmp.ne.s32.totalorder (!%p2153_p3), %s2140_s27, 0 }
  0x79   : > { %289 = sbr.rel (%p2153_p3) target bundleno = 1576 (0x628), region = 44  ;;  %s1221_s8 = sshll.u32 (!%p2153_p3), %s1944_s4, 4 }
  0x7a   : > { %s292_s10 = scalar_lea.sflag (!%p2153_p3), [#allocation3], %s1944_s4  ;;  %s1950_s17 = scalar_lea.vmem (!%p2153_p3), [#allocation2], %s1221_s8 }
  0x7e   : > { %1668 = dma.done.wait (%p2154_p8), %s292_s10, 256  }
  0x7f   : > { %1670 = vsyncadd (%p2154_p8), %s292_s10, 4294967040  ;;  %s300_s0 = sand.u32 1, %s1781_s25   ;;  %s1222_s3 = sshll.u32 %s1944_s4, 3 }
  0x80   : > { %s301_s29 = scalar_lea.sflag [#allocation6], %s300_s0  ;;  %s304_s7 = scalar_lea.vmem [#allocation5], %s1222_s3 }
  0x81   : > { %1672 = dma.done.wait (%p2154_p8), %s301_s29, 128  }
  0x82   : > { %1674 = vsyncadd (%p2154_p8), %s301_s29, 4294967168  ;;  %p2155_p2 = scmp.eq.s32.totalorder %s1781_s25, 0 }
  0x84   : > { %1676 = dma.done.wait (%p2155_p2), [#allocation6], 512   ;;  %p2156_p5 = pmov %p2155_p2 }
  0x85   : > { %p2157_p7 = pmov %p2155_p2 }
  0x86   : > { %1678 = vsyncadd (%p2156_p5), [#allocation6], 4294966784 }
  0x87   : > { %1680 = dma.done.wait (%p2157_p7), [#allocation9], 1024   ;;  %p2158_p12 = pmov %p2155_p2 }
  0x88   : > { %v1710_v0 = vmov 0.0   ;;  %vm1711_vm0 = vmmov 0   ;;  %v358_v1 = vld [vmem:[#allocation7 + $0x10] sm:$0xff]  ;;  %v359_v2 = vld [vmem:[#allocation7 + $0x18] sm:$0xff]  ;;  %v356_v6 = vld [vmem:[#allocation7] sm:$0xff]  ;;  %vm367_vm1 = vcmask 261120  }
  0x89   : > { %1682 = vsyncadd (%p2158_p12), [#allocation9], 4294966272  ;;  %1274 = vmatprep.subr.bf16.mxu0 %v1710_v0  ;;  %1282 = vmatprep.subr.bf16.mxu1 %v1710_v0  ;;  %v414_v3 = vld [vmem:[#allocation8 + $0x10] sm:$0xff]  ;;  %v361_v4 = vpack.c.bf16 %v359_v2, %v358_v1  ;;  %v415_v5 = vld [vmem:[#allocation8 + $0x18] sm:$0xff]  ;;  %vm480_vm2 = vcmask 64512   ;;  %s1712_s20 = smov 112  }
  0x8a   : > { %1278 = vmatprep.mubr.msk.bf16.mxu0 %vm1711_vm0, %v1710_v0  ;;  %1286 = vmatprep.mubr.msk.bf16.mxu1 %vm1711_vm0, %v1710_v0  ;;  %v357_v7 = vld [vmem:[#allocation7 + $0x8] sm:$0xff]  ;;  %v417_v8 = vpack.c.bf16 %v415_v5, %v414_v3  ;;  %v412_v9 = vld [vmem:[#allocation8] sm:$0xff]  ;;  %v354_v15 = vld [vmem:[%s304_s7] sm:$0xff]  ;;  %s1713_s30 = smov 120   ;;  %s1714_s14 = smov 104   ;;  %vm559_vm3 = vcmask 1043456  }
  0x8b   : > { %v413_v10 = vld [vmem:[#allocation8 + $0x8] sm:$0xff]  ;;  %1275 = vmatpush3.bf16.msra.mxu0 %v361_v4  ;;  %v360_v11 = vpack.c.bf16 %v357_v7, %v356_v6  ;;  %v351_v12 = vld [vmem:[%s1950_s17] sm:$0xff]  ;;  %v355_v17 = vpack.c.bf16 %v354_v15, %v354_v15  ;;  %s1715_s19 = smov 32   ;;  %s1716_s26 = smov 96   ;;  %vm1007_vm4 = vcmask 130048   ;;  %vm1010_vm5 = vcmask 195584  }
  0x8c   : > { %v352_v13 = vld [vmem:[%s1950_s17 + $0x8] sm:$0xff]  ;;  %1283 = vmatpush3.bf16.msra.mxu1 %v417_v8  ;;  %1276 = vmatprep.subr.bf16.mxu0 %v1710_v0  ;;  %v416_v14 = vpack.c.bf16 %v413_v10, %v412_v9  ;;  %v1230_v18 = vld [vmem:[%s2129_s5 + $0x1] ss:$0 sm:$0xff]  ;;  %v1227_v19 = vld [vmem:[%s2129_s5] ss:$0 sm:$0xff]  ;;  %s1717_s10 = smov 88  }
  0x8d   : > { %1284 = vmatprep.subr.bf16.mxu1 %v1710_v0  ;;  %v353_v16 = vpack.c.bf16 %v352_v13, %v351_v12  ;;  %v1231_v12 = vld [vmem:[%s2129_s5 + $0x2] ss:$0 sm:$0xff]  ;;  %s1718_s17 = smov 80   ;;  %s1719_s0 = smov 72  }
  0x8e   : > { %s1720_s3 = smov 8   ;;  %s1721_s29 = smov 16  }
  0x8f   : > { %1277 = vmatpush3.bf16.msra.mxu0 %v360_v11  ;;  %s1722_s7 = smov 24   ;;  %s349_s15 = scalar_lea.vmem [#allocation11], %s1221_s8 }
  0x90   : > { %1285 = vmatpush3.bf16.msra.mxu1 %v416_v14  ;;  %1290 = vmatprep.subr.bf16.mxu0 %v1710_v0  ;;  %s1085_s16 = sshll.u32 %s349_s15, 4  ;;  %s1072_s8 = scalar_lea.sflag [#allocation4], %s1944_s4  ;;  %s2074_s16 = int_to_ptr.vmem [resolvable:$true] %s1085_s16 }
  0x91   : > { %1296 = vmatprep.subr.bf16.mxu1 %v1710_v0  ;;  %s1625_s2 = scalar_lea.vmem %s2074_s16, 256  ;;  %p2159_p13 = scmp.ne.s32.totalorder %s2147_s13, 0 }
  0x92   : > { %1279 = vmatmul.mubr.msk.bf16.vlgmr.msra.gmra.mxu0 %vm367_vm1, %v353_v16  ;;  %p1626_p9 = scmp.ne.s32.totalorder %s2074_s16, %s1625_s2 }
  0x93   : > { %1287 = vmatmul.mubr.msk.bf16.vlgmr.msra.gmra.mxu1 %vm367_vm1, %v355_v17  ;;  %1292 = vmatprep.mubr.msk.bf16.mxu0 %vm1711_vm0, %v1710_v0 }
  0x94   : > { %1298 = vmatprep.mubr.msk.bf16.mxu1 %vm1711_vm0, %v1710_v0  ;;  %p1627_p0 = pnand %p1626_p9, %p2159_p13 }
  0x96   : > { %p1628_p11 = pneg %p1627_p0 }
 0x152   : > { %v405_v20 = vpop.f32.mrf.mxu0 }
 0x153   : > { %v1994_v21 = vpop.f32.mrf.mxu1  ;;  %v406_v24 = vadd.f32 %v1227_v19, %v405_v20 }
 0x154   : > { %v466_v22 = vadd.f32 %v1230_v18, %v1994_v21  ;;  %v1280_v23 = vpop.f32.mrf.mxu0 }
 0x155   : > { %v1288_v25 = vpop.f32.mrf.mxu1 }
 0x156   : > { %v478_v26 = vpack.c.bf16 %v466_v22, %v466_v22  ;;  %v408_v27 = vpop.f32.mrf.mxu0 }
 0x157   : > { %v409_v28 = vadd.f32 %v1227_v19, %v408_v27  ;;  %v458_v29 = vpop.f32.mrf.mxu1 }
 0x158   : > { %733 = vrot.lane.b32.xlu1 %v478_v26, %s1712_s20  ;;  %608 = vrot.lane.b32.xlu0 %v478_v26, %s1713_s30  ;;  %v1281_v30 = vpop.f32.mrf.mxu0  ;;  %v485_v31 = vsel %vm480_vm2, %v478_v26, 0 }
 0x159   : > { %v477_v32 = vpack.c.bf16 %v409_v28, %v406_v24  ;;  %v1289_v33 = vpop.f32.mrf.mxu1  ;;  %1291 = vmatpush3.bf16.xpose.msra.mxu0 %v485_v31 }
 0x15a   : > { %1302 = vmatprep.subr.bf16.mxu0 %v1710_v0 }
 0x15c   : > { %731 = vrot.lane.b32.xlu1 %v477_v32, %s1712_s20  ;;  %605 = vrot.lane.b32.xlu0 %v477_v32, %s1713_s30  ;;  %s1248_s20 = sshll.u32 %s1781_s25, 8  ;;  %s1723_s25 = smov [#allocation11]  }
 0x15d   : > { %s2079_s18 = scalar_lea.hbm %s2130_s6, %s1248_s20 }
 0x160   : > { %856 = vrot.lane.b32.xlu1 %v477_v32, %s1714_s14  ;;  %858 = vrot.lane.b32.xlu0 %v478_v26, %s1714_s14 }
 0x161   : > { %1293 = vmatmul.mubr.msk.bf16.vlgmr.msra.gmra.mxu0 %vm480_vm2, %v477_v32 }
 0x162   : > { %1304 = vmatprep.mubr.msk.bf16.mxu0 %vm1711_vm0, %v1710_v0 }
 0x1ca   : > { %v609_v34 = vpop.permute.xlu0 %608  ;;  %v734_v36 = vpop.permute.xlu1 %733 }
 0x1cb   : > { %v614_v35 = vsel %vm480_vm2, %v609_v34, 0  ;;  %v739_v38 = vsel %vm480_vm2, %v734_v36, 0 }
 0x1cc   : > { %1303 = vmatpush3.bf16.xpose.msra.mxu0 %v614_v35 }
 0x1cd   : > { %1314 = vmatprep.subr.bf16.mxu0 %v1710_v0 }
 0x1ce   : > { %v606_v37 = vpop.permute.xlu0 %605  ;;  %v732_v40 = vpop.permute.xlu1 %731 }
 0x1d2   : > { %v859_v39 = vpop.permute.xlu0 %858  ;;  %v857_v42 = vpop.permute.xlu1 %856 }
 0x1d3   : > { %1305 = vmatmul.mubr.msk.bf16.vlgmr.msra.gmra.mxu0 %vm480_vm2, %v606_v37  ;;  %v864_v41 = vsel %vm480_vm2, %v859_v39, 0 }
 0x1d4   : > { %1315 = vmatpush3.bf16.xpose.msra.mxu0 %v739_v38  ;;  %1316 = vmatprep.mubr.msk.bf16.mxu0 %vm1711_vm0, %v1710_v0 }
 0x1d5   : > { %1326 = vmatprep.subr.bf16.mxu0 %v1710_v0 }
 0x1db   : > { %1317 = vmatmul.mubr.msk.bf16.vlgmr.msra.gmra.mxu0 %vm480_vm2, %v732_v40 }
 0x1dc   : > { %1327 = vmatpush3.bf16.xpose.msra.mxu0 %v864_v41  ;;  %1328 = vmatprep.mubr.msk.bf16.mxu0 %vm1711_vm0, %v1710_v0 }
 0x1dd   : > { %1338 = vmatprep.subr.bf16.mxu0 %v1710_v0 }
 0x1e3   : > { %1329 = vmatmul.mubr.msk.bf16.vlgmr.msra.gmra.mxu0 %vm480_vm2, %v857_v42 }
 0x1e4   : > { %1342 = vmatprep.mubr.msk.bf16.mxu0 %vm1711_vm0, %v1710_v0 }
 0x221   : > { %v521_v43 = vpop.f32.mrf.mxu0 }
 0x222   : > { %v528_v44 = vmul.f32 0.35355338, %v521_v43 }
 0x223   : > { %v1294_v45 = vpop.f32.mrf.mxu0 }
 0x224   : > { %v530_v46 = vsel %vm480_vm2, %v528_v44, -inf }
 0x225   : > { %531 = vmax.xlane.f32.xlu0 %v530_v46  ;;  %v524_v47 = vpop.f32.mrf.mxu0 }
 0x226   : > { %v529_v48 = vmul.f32 0.35355338, %v524_v47 }
 0x227   : > { %v1295_v49 = vpop.f32.mrf.mxu0 }
 0x228   : > { %v533_v50 = vsel %vm480_vm2, %v529_v48, -inf }
 0x229   : > { %534 = vmax.xlane.f32.xlu1 %v533_v50 }
 0x293   : > { %v650_v51 = vpop.f32.mrf.mxu0 }
 0x294   : > { %v657_v52 = vmul.f32 0.35355338, %v650_v51 }
 0x295   : > { %v1306_v53 = vpop.f32.mrf.mxu0 }
 0x296   : > { %v659_v54 = vsel %vm480_vm2, %v657_v52, -inf }
 0x297   : > { %660 = vmax.xlane.f32.xlu0 %v659_v54  ;;  %v653_v55 = vpop.f32.mrf.mxu0 }
 0x298   : > { %v658_v56 = vmul.f32 0.35355338, %v653_v55 }
 0x299   : > { %v1307_v57 = vpop.f32.mrf.mxu0 }
 0x29a   : > { %v662_v58 = vsel %vm480_vm2, %v658_v56, -inf }
 0x29b   : > { %663 = vmax.xlane.f32.xlu0 %v662_v58  ;;  %v775_v59 = vpop.f32.mrf.mxu0 }
 0x29c   : > { %v782_v60 = vmul.f32 0.35355338, %v775_v59 }
 0x29d   : > { %v1318_v61 = vpop.f32.mrf.mxu0 }
 0x29e   : > { %v784_v62 = vsel %vm480_vm2, %v782_v60, -inf }
 0x29f   : > { %785 = vmax.xlane.f32.xlu1 %v784_v62  ;;  %v778_v63 = vpop.f32.mrf.mxu0 }
 0x2a0   : > { %v783_v1 = vmul.f32 0.35355338, %v778_v63 }
 0x2a1   : > { %v1319_v2 = vpop.f32.mrf.mxu0 }
 0x2a2   : > { %v787_v3 = vsel %vm480_vm2, %v783_v1, -inf }
 0x2a3   : > { %788 = vmax.xlane.f32.xlu0 %v787_v3  ;;  %v900_v4 = vpop.f32.mrf.mxu0 }
 0x2a4   : > { %v907_v5 = vmul.f32 0.35355338, %v900_v4 }
 0x2a5   : > { %v1330_v6 = vpop.f32.mrf.mxu0 }
 0x2a6   : > { %v909_v7 = vsel %vm480_vm2, %v907_v5, -inf }
 0x2a7   : > { %910 = vmax.xlane.f32.xlu1 %v909_v7  ;;  %v903_v8 = vpop.f32.mrf.mxu0 }
 0x2a8   : > { %v908_v9 = vmul.f32 0.35355338, %v903_v8 }
 0x2a9   : > { %v1331_v10 = vpop.f32.mrf.mxu0 }
 0x2aa   : > { %v912_v11 = vsel %vm480_vm2, %v908_v9, -inf }
 0x2ab   : > { %913 = vmax.xlane.f32.xlu0 %v912_v11 }
 0x2ae   : > { %v532_v24 = vpop.xlane.xlu0 %531 }
 0x2af   : > { %v536_v25 = vsub.f32 %v528_v44, %v532_v24 }
 0x2b1   : > { %v538_v27 = vmul.f32 1.442695, %v536_v25 }
 0x2b2   : > { %v535_v13 = vpop.xlane.xlu1 %534 }
 0x2b3   : > { %v537_v28 = vsub.f32 %v529_v48, %v535_v13 }
 0x2b5   : > { %v540_v29 = vmul.f32 1.442695, %v537_v28 }
 0x2b8   : > { %473 = vrot.lane.b32.xlu1 %v1231_v12, %s1715_s19  ;;  %s1629_s19 = sshll.u32 %s1723_s25, 4  ;;  %s1630_s19 = int_to_ptr.vmem [resolvable:$false] %s1629_s19 }
 0x2b9   : > { %p1632_p10 = scmp.lt.s32.totalorder %s2074_s16, %s1630_s19 }
 0x320   : > { %v661_v26 = vpop.xlane.xlu0 %660 }
 0x321   : > { %v665_v30 = vsub.f32 %v657_v52, %v661_v26 }
 0x323   : > { %v667_v31 = vmul.f32 1.442695, %v665_v30 }
 0x328   : > { %v786_v14 = vpop.xlane.xlu1 %785 }
 0x329   : > { %v790_v15 = vsub.f32 %v782_v60, %v786_v14 }
 0x32b   : > { %v792_v16 = vmul.f32 1.442695, %v790_v15 }
 0x32d   : > { %1459 = vpow2.f32 %v792_v16 }
 0x32e   : > { %1461 = vpow2.f32 %v538_v27 }
 0x32f   : > { %1463 = vpow2.f32 %v540_v29 }
 0x330   : > { %v911_v17 = vpop.xlane.xlu1 %910  ;;  %1465 = vpow2.f32 %v667_v31 }
 0x331   : > { %v915_v37 = vsub.f32 %v907_v5, %v911_v17 }
 0x333   : > { %v917_v40 = vmul.f32 1.442695, %v915_v37  ;;  %v1017_v37 = vld [vmem:[#allocation10 + $0x18] sm:$0xff] }
 0x334   : > { %v474_v18 = vpop.permute.xlu1 %473 }
 0x335   : > { %v476_v19 = vadd.f32 %v474_v18, %v1994_v21  ;;  %v664_v21 = vpop.xlane.xlu0 %663 }
 0x336   : > { %v666_v32 = vsub.f32 %v658_v56, %v664_v21 }
 0x337   : > { %v479_v20 = vpack.c.bf16 %v476_v19, %v476_v19 }
 0x338   : > { %v669_v34 = vmul.f32 1.442695, %v666_v32 }
 0x339   : > { %554 = vrot.lane.b32.xlu0 %v479_v20, %s1716_s26  ;;  %v789_v33 = vpop.xlane.xlu0 %788  ;;  %s1631_s26 = scalar_lea.vmem %s1630_s19, 512 }
 0x33a   : > { %v2029_v22 = vpop.eup %1459  ;;  %v791_v35 = vsub.f32 %v783_v1, %v789_v33  ;;  %1467 = vpow2.f32 %v669_v34  ;;  %p1633_p1 = scmp.lt.s32.totalorder %s1631_s26, %s1625_s2 }
 0x33b   : > { %v796_v23 = vsel %vm480_vm2, %v2029_v22, 0.0  ;;  %v1462_v38 = vpop.eup %1461 }
 0x33c   : > { %797 = vadd.xlane.f32.xlu1 %v796_v23  ;;  %v794_v36 = vmul.f32 1.442695, %v791_v35  ;;  %v542_v42 = vsel %vm480_vm2, %v1462_v38, 0.0  ;;  %v1464_v43 = vpop.eup %1463  ;;  %p1634_p4 = por %p1633_p1, %p1632_p10 }
 0x33d   : > { %682 = vrot.lane.b32.xlu0 %v479_v20, %s1717_s10  ;;  %v914_v39 = vpop.xlane.xlu0 %913  ;;  %v545_v45 = vsel %vm480_vm2, %v1464_v43, 0.0  ;;  %v1466_v46 = vpop.eup %1465 }
 0x33e   : > { %1469 = vpow2.f32 %v794_v36  ;;  %v916_v41 = vsub.f32 %v908_v9, %v914_v39  ;;  %v671_v47 = vsel %vm480_vm2, %v1466_v46, 0.0  ;;  %v1016_v36 = vld [vmem:[#allocation10 + $0x10] sm:$0xff]  ;;  %p1635_p6 = pnand %p1634_p4, %p1628_p11 }
 0x33f   : > { %1471 = vpow2.f32 %v917_v40  ;;  %v1019_v39 = vpack.c.bf16 %v1017_v37, %v1016_v36 }
 0x340   : > { %v919_v44 = vmul.f32 1.442695, %v916_v41 }
 0x341   : > { %1339 = vmatpush3.bf16.msra.mxu0 %v1019_v39 }
 0x342   : > { %1473 = vpow2.f32 %v919_v44  ;;  %1340 = vmatprep.subr.bf16.mxu0 %v1710_v0  ;;  %v1015_v44 = vld [vmem:[#allocation10 + $0x8] sm:$0xff] }
 0x347   : > { %v1468_v48 = vpop.eup %1467 }
 0x348   : > { %v674_v49 = vsel %vm480_vm2, %v1468_v48, 0.0 }
 0x34b   : > { %v1470_v50 = vpop.eup %1469 }
 0x34c   : > { %v799_v51 = vsel %vm480_vm2, %v1470_v50, 0.0  ;;  %v2038_v52 = vpop.eup %1471 }
 0x34d   : > { %807 = vrot.lane.b32.xlu1 %v479_v20, %s1718_s17  ;;  %v921_v53 = vsel %vm480_vm2, %v2038_v52, 0.0 }
 0x34f   : > { %v1474_v54 = vpop.eup %1473 }
 0x350   : > { %v924_v55 = vsel %vm480_vm2, %v1474_v54, 0.0 }
 0x35c   : > { %543 = vadd.xlane.f32.xlu0 %v542_v42 }
 0x360   : > { %546 = vadd.xlane.f32.xlu0 %v545_v45 }
 0x364   : > { %672 = vadd.xlane.f32.xlu0 %v671_v47 }
 0x368   : > { %675 = vadd.xlane.f32.xlu0 %v674_v49 }
 0x36c   : > { %800 = vadd.xlane.f32.xlu0 %v799_v51 }
 0x370   : > { %922 = vadd.xlane.f32.xlu0 %v921_v53 }
 0x374   : > { %925 = vadd.xlane.f32.xlu0 %v924_v55 }
 0x38a   : > { %932 = vrot.lane.b32.xlu0 %v479_v20, %s1719_s0 }
 0x3ab   : > { %v555_v56 = vpop.permute.xlu0 %554 }
 0x3ac   : > { %v561_v57 = vsel %vm559_vm3, %v555_v56, 0 }
 0x3ad   : > { %1297 = vmatpush3.bf16.msra.mxu1 %v561_v57 }
 0x3ae   : > { %1308 = vmatprep.subr.bf16.mxu1 %v1710_v0 }
 0x3af   : > { %v683_v58 = vpop.permute.xlu0 %682 }
 0x3b0   : > { %v688_v8 = vsel %vm559_vm3, %v683_v58, 0 }
 0x3c5   : > { %v798_v1 = vpop.xlane.xlu1 %797 }
 0x3c9   : > { %v808_v14 = vpop.permute.xlu1 %807 }
 0x3ca   : > { %v813_v17 = vsel %vm559_vm3, %v808_v14, 0 }
 0x3e5   : > { %v544_v59 = vpop.xlane.xlu0 %543 }
 0x3e6   : > { %1475 = vrcp.f32 %v544_v59 }
 0x3e9   : > { %v547_v60 = vpop.xlane.xlu0 %546 }
 0x3ea   : > { %1477 = vrcp.f32 %v547_v60 }
 0x3ed   : > { %v673_v61 = vpop.xlane.xlu0 %672 }
 0x3ee   : > { %1479 = vrcp.f32 %v673_v61 }
 0x3f1   : > { %v676_v62 = vpop.xlane.xlu0 %675 }
 0x3f2   : > { %1481 = vrcp.f32 %v676_v62 }
 0x3f3   : > { %v1476_v63 = vpop.eup %1475 }
 0x3f4   : > { %v550_v4 = vmul.f32 %v1476_v63, %v1462_v38 }
 0x3f5   : > { %v801_v2 = vpop.xlane.xlu0 %800 }
 0x3f6   : > { %1483 = vrcp.f32 %v801_v2 }
 0x3f7   : > { %v1478_v3 = vpop.eup %1477  ;;  %1485 = vrcp.f32 %v798_v1 }
 0x3f8   : > { %v551_v5 = vmul.f32 %v1478_v3, %v1464_v43  ;;  %v1014_v43 = vld [vmem:[#allocation10] sm:$0xff] }
 0x3f9   : > { %v923_v6 = vpop.xlane.xlu0 %922  ;;  %v1018_v45 = vpack.c.bf16 %v1015_v44, %v1014_v43 }
 0x3fa   : > { %v552_v7 = vpack.c.bf16 %v551_v5, %v550_v4 }
 0x3fb   : > { %v1480_v9 = vpop.eup %1479  ;;  %1341 = vmatpush3.bf16.msra.mxu0 %v1018_v45 }
 0x3fc   : > { %1299 = vmatmul.mubr.msk.bf16.vlgmr.msra.gmra.mxu1 %vm480_vm2, %v552_v7  ;;  %v679_v12 = vmul.f32 %v1480_v9, %v1466_v46 }
 0x3fd   : > { %1309 = vmatpush3.bf16.msra.mxu1 %v688_v8  ;;  %v926_v10 = vpop.xlane.xlu0 %925  ;;  %1310 = vmatprep.mubr.msk.bf16.mxu1 %vm1711_vm0, %v1710_v0 }
 0x3fe   : > { %1487 = vrcp.f32 %v926_v10  ;;  %1320 = vmatprep.subr.bf16.mxu1 %v1710_v0 }
 0x3ff   : > { %v1482_v11 = vpop.eup %1481  ;;  %1489 = vrcp.f32 %v923_v6  ;;  %v1240_v6 = vld [vmem:[%s2129_s5 + $0x3] ss:$0 sm:$0xff] }
 0x400   : > { %v680_v13 = vmul.f32 %v1482_v11, %v1468_v48 }
 0x401   : > { %v933_v23 = vpop.permute.xlu0 %932 }
 0x402   : > { %v681_v15 = vpack.c.bf16 %v680_v13, %v679_v12  ;;  %v938_v26 = vsel %vm559_vm3, %v933_v23, 0 }
 0x403   : > { %v1484_v16 = vpop.eup %1483 }
 0x404   : > { %1311 = vmatmul.mubr.msk.bf16.vlgmr.msra.gmra.mxu1 %vm480_vm2, %v681_v15  ;;  %v1486_v18 = vpop.eup %1485  ;;  %v805_v19 = vmul.f32 %v1484_v16, %v1470_v50 }
 0x405   : > { %1321 = vmatpush3.bf16.msra.mxu1 %v813_v17  ;;  %1322 = vmatprep.mubr.msk.bf16.mxu1 %vm1711_vm0, %v1710_v0  ;;  %v804_v20 = vmul.f32 %v1486_v18, %v2029_v22 }
 0x406   : > { %1332 = vmatprep.subr.bf16.mxu1 %v1710_v0 }
 0x407   : > { %v806_v24 = vpack.c.bf16 %v805_v19, %v804_v20 }
 0x40b   : > { %v1488_v25 = vpop.eup %1487 }
 0x40c   : > { %1323 = vmatmul.mubr.msk.bf16.vlgmr.msra.gmra.mxu1 %vm480_vm2, %v806_v24  ;;  %v1490_v27 = vpop.eup %1489  ;;  %v930_v28 = vmul.f32 %v1488_v25, %v1474_v54 }
 0x40d   : > { %1333 = vmatpush3.bf16.msra.mxu1 %v938_v26  ;;  %1334 = vmatprep.mubr.msk.bf16.mxu1 %vm1711_vm0, %v1710_v0  ;;  %v929_v29 = vmul.f32 %v1490_v27, %v2038_v52 }
 0x40f   : > { %v931_v30 = vpack.c.bf16 %v930_v28, %v929_v29 }
 0x414   : > { %1335 = vmatmul.mubr.msk.bf16.vlgmr.msra.gmra.mxu1 %vm480_vm2, %v931_v30 }
 0x4bc   : > { %v597_v21 = vpop.f32.mrf.mxu1 }
 0x4be   : > { %v1300_v22 = vpop.f32.mrf.mxu1 }
 0x4c0   : > { %v600_v31 = vpop.f32.mrf.mxu1 }
 0x4c2   : > { %v1301_v32 = vpop.f32.mrf.mxu1 }
 0x4c4   : > { %v724_v33 = vpop.f32.mrf.mxu1 }
 0x4c6   : > { %v1312_v34 = vpop.f32.mrf.mxu1 }
 0x4c8   : > { %v727_v35 = vpop.f32.mrf.mxu1 }
 0x4c9   : > { %v1444_v38 = vpack.i.bf16 %v727_v35, %v724_v33 }
 0x4ca   : > { %v1313_v40 = vpop.f32.mrf.mxu1 }
 0x4cb   : > { %1445 = vrot.lane.b32.xlu0 %v1444_v38, %s1720_s3 }
 0x4cc   : > { %v849_v41 = vpop.f32.mrf.mxu1 }
 0x4ce   : > { %v1324_v42 = vpop.f32.mrf.mxu1 }
 0x4d0   : > { %v852_v46 = vpop.f32.mrf.mxu1 }
 0x4d1   : > { %v1449_v47 = vpack.i.bf16 %v852_v46, %v849_v41 }
 0x4d2   : > { %v1325_v48 = vpop.f32.mrf.mxu1 }
 0x4d3   : > { %1450 = vrot.lane.b32.xlu0 %v1449_v47, %s1721_s29 }
 0x4d4   : > { %v974_v49 = vpop.f32.mrf.mxu1 }
 0x4d6   : > { %v1336_v50 = vpop.f32.mrf.mxu1 }
 0x4d8   : > { %v977_v51 = vpop.f32.mrf.mxu1 }
 0x4d9   : > { %v1454_v52 = vpack.i.bf16 %v977_v51, %v974_v49 }
 0x4da   : > { %v1337_v53 = vpop.f32.mrf.mxu1 }
 0x4db   : > { %1455 = vrot.lane.b32.xlu0 %v1454_v52, %s1722_s7 }
 0x53d   : > { %v1446_v54 = vpop.permute.xlu0 %1445 }
 0x53e   : > { %v1448_v0 = vunpack.i.h.bf16 %v1446_v54  ;;  %v1447_v56 = vunpack.i.l.bf16 %v1446_v54 }
 0x540   : > { %v1006_v60 = vsel %vm480_vm2, %v600_v31, %v1448_v0  ;;  %v1005_v61 = vsel %vm480_vm2, %v597_v21, %v1447_v56 }
 0x545   : > { %v1451_v55 = vpop.permute.xlu0 %1450 }
 0x546   : > { %v1453_v57 = vunpack.i.h.bf16 %v1451_v55  ;;  %v1452_v58 = vunpack.i.l.bf16 %v1451_v55 }
 0x548   : > { %v1008_v1 = vsel %vm1007_vm4, %v1005_v61, %v1452_v58  ;;  %v1009_v2 = vsel %vm1007_vm4, %v1006_v60, %v1453_v57 }
 0x54d   : > { %v1456_v59 = vpop.permute.xlu0 %1455 }
 0x54e   : > { %v1458_v62 = vunpack.i.h.bf16 %v1456_v59  ;;  %v1457_v63 = vunpack.i.l.bf16 %v1456_v59 }
 0x550   : > { %v1011_v3 = vsel %vm1010_vm5, %v1008_v1, %v1457_v63  ;;  %v1012_v4 = vsel %vm1010_vm5, %v1009_v2, %v1458_v62 }
 0x551   : > { %v1013_v5 = vpack.c.bf16 %v1012_v4, %v1011_v3 }
 0x553   : > { %1343 = vmatmul.mubr.msk.bf16.vlgmr.msra.gmra.mxu0 %vm367_vm1, %v1013_v5 }
 0x613   : > { %v1062_v7 = vpop.f32.mrf.mxu0 }
 0x614   : > { %v1063_v8 = vadd.f32 %v1240_v6, %v1062_v7 }
 0x615   : > { %v1344_v9 = vpop.f32.mrf.mxu0 }
 0x616   : > { %1069 = vst.msk [vmem:[%s349_s15] sm:$0xff] %vm367_vm1, %v1063_v8 }
 0x617   : > { %v1065_v10 = vpop.f32.mrf.mxu0 }
 0x618   : > { %v1066_v11 = vadd.f32 %v1240_v6, %v1065_v10 }
 0x619   : > { %v1345_v12 = vpop.f32.mrf.mxu0 }
 0x61a   : > { %1070 = vst.msk [vmem:[%s349_s15 + $0x8] sm:$0xff] %vm367_vm1, %v1066_v11 }
 0x61b   : > { %1638 = shalt.err (!%p1635_p6)
}
 0x61c   : > { %s1639_s10 = scalar_lea.hbm %s2079_s18, 256  ;;  %s1643_s29 = scalar_lea.hbm %s2130_s6, 512 }
 0x61d   : > { %p1640_p3 = scmp.ne.s32.totalorder %s2079_s18, %s1639_s10  ;;  %p1644_p5 = scmp.lt.s32.totalorder %s2079_s18, %s2130_s6 }
 0x61e   : > { %p1645_p7 = scmp.lt.s32.totalorder %s1643_s29, %s1639_s10 }
 0x61f   : > { %p1641_p8 = pnand %p1640_p3, %p2159_p13 }
 0x620   : > { %p1646_p12 = por %p1645_p7, %p1644_p5 }
 0x621   : > { %p1642_p2 = pneg %p1641_p8 }
 0x623   : > { %p1647_p9 = pnand %p1646_p12, %p1642_p2 }
 0x625   : > { %1650 = shalt.err (!%p1647_p9)
}
 0x626   : > { %s1724_s12 = smov 128  }
 0x627   : > { %1362 = dma.vmem_to_hbm [thread:$0]  (%p2159_p13), %s2074_s16, 256, %s2079_s18, %s1072_s8, %s1724_s12, %s1724_s12, %s1720_s3  }
 0x628 PF: > { %s1100_s15 = sand.u32 1, %s1689_s21   ;;  %p2160_p0 = scmp.ne.s32.totalorder %s2141_s28, 0 }
 0x629   : > { %p2161_p11 = scmp.ge.s32.totalorder %s1701_s24, 2  ;;  %s1101_s20 = scalar_lea.sflag [#allocation4], %s1100_s15 }
 0x62b   : > { %p1382_p10 = pnand %p2161_p11, %p2160_p0 }
 0x62d   : > { %p1383_p1 = pneg %p1382_p10 }
 0x62f   : > { %1684 = dma.done.wait (%p1383_p1), %s1101_s20, 256  }
 0x630   : > { %1686 = vsyncadd (%p1383_p1), %s1101_s20, 4294967040  ;;  %p23_p4 = scmp.ge.s32.totalorder %s1849_s9, 4   ;;  %s2162_s21 = smov %s1693_s22 }
 0x631   : > { %s2163_s22 = smov %s1697_s23  ;;  %s2164_s23 = smov %s1859_s11 }
 0x632   : > { %s2165_s24 = smov %s1849_s9  ;;  %25 = sbr.rel (!%p23_p4) target bundleno = 13 (0xd), region = 114 }
 0x637   :  { %1106 = vsyncpa [#allocation3], 1 }
 0x638   :  { %1108 = vsyncpa [#allocation3 + $0x1], 1 }
 0x639   :  { %1109 = vsyncpa [#allocation6], 1 }
 0x63a   :  { %1111 = vsyncpa [#allocation6 + $0x1], 1 }
 0x63b   :  { %1112 = vsyncpa [#allocation9], 1 }
 0x63c   :  { %1113 = vsyncpa [#allocation4], 1 }
 0x63d   :  { %1115 = vsyncpa [#allocation4 + $0x1], 1 }

</bundles_post_ra>
